<compile_context>
chip_gen: v6e
topology: v6e:2x2x1
jax: 0.10.0
libtpu: 0.0.40
codegen_flags: <defaults>
</compile_context>

<pallas_src>
import functools

import jax
import jax.numpy as jnp
from jax.experimental import pallas as pl
from jax.experimental.pallas import tpu as pltpu


def _round_up(x, m):
    return ((x + m - 1) // m) * m


def _gcn_fused_kernel(x_ref, sup_ref, w1_ref, w2_ref, o_ref, pre_ref, h_ref,
                      *, support_num, tm, p):
    """Fused 2-layer GCN.

    grid = (phase, row_tile):
      phase 0: h[rows]   = relu(sum_i sup_i[rows,:] @ (x @ W1_i))
      phase 1: out[rows] =       sum_i sup_i[rows,:] @ (h @ W2_i)
    pre_ref holds the lane-stacked pre-multiplication [X@W_0 | X@W_1 | ...]
    for the current phase; h_ref holds the full layer-1 output.
    """
    phase = pl.program_id(0)
    row = pl.program_id(1)

    # --- stacked pre-multiplication, computed once at the start of each phase.
    @pl.when((phase == 0) & (row == 0))
    def _():
        pre_ref[...] = jnp.dot(
            x_ref[...], w1_ref[...],
            preferred_element_type=jnp.float32).astype(pre_ref.dtype)

    @pl.when((phase == 1) & (row == 0))
    def _():
        pre_ref[...] = jnp.dot(
            h_ref[...], w2_ref[...],
            preferred_element_type=jnp.float32).astype(pre_ref.dtype)

    # --- row-tile aggregation:  acc = sum_i support_i[row_tile, :] @ pre_i
    acc = jnp.zeros((tm, p), jnp.float32)
    for i in range(support_num):  # small static loop, unrolled at trace time
        acc = acc + jnp.dot(sup_ref[i], pre_ref[:, i * p:(i + 1) * p],
                            preferred_element_type=jnp.float32)

    @pl.when(phase == 0)
    def _():
        h_tile = jnp.maximum(acc, 0.0).astype(h_ref.dtype)       # layer-1 ReLU
        h_ref[pl.ds(pl.multiple_of(row * tm, tm), tm), :] = h_tile
        # Keep the output block defined during phase 0; overwritten in phase 1.
        o_ref[...] = h_tile.astype(o_ref.dtype)

    @pl.when(phase == 1)
    def _():
        o_ref[...] = acc.astype(o_ref.dtype)                     # layer-2, no act


def gcn_forward(x, support, W1, W2, *, row_tile=256):
    """x: (N, F_in), support: (S, N, N), W1: (S, F_in, H), W2: (S, H, F_out)."""
    N, f_in = x.shape
    S, n1, n2 = support.shape
    hidden = W1.shape[2]
    f_out = W2.shape[2]
    assert n1 == N and n2 == N
    assert W1.shape == (S, f_in, hidden)
    assert W2.shape == (S, hidden, f_out)

    dtype = x.dtype
    lane = 128
    P = _round_up(max(f_in, hidden, f_out), lane)   # common padded feature width
    n8 = _round_up(N, 8)
    tm = min(row_tile, n8)                          # node-row tile (multiple of 8)
    n_pad = _round_up(n8, tm)
    r_tiles = n_pad // tm

    # --- zero-pad inputs / lane-stack weights (wrapper-side layout plumbing).
    def stack_w(W, din, dout):
        Wp = jnp.zeros((S, P, P), dtype).at[:, :din, :dout].set(W.astype(dtype))
        # (S, P, P) -> (P, S*P): columns [i*P:(i+1)*P] hold W_i (zero-padded).
        return jnp.transpose(Wp, (1, 0, 2)).reshape(P, S * P)

    x_p = jnp.zeros((n_pad, P), dtype).at[:N, :f_in].set(x)
    sup_p = jnp.zeros((S, n_pad, n_pad), dtype).at[:, :N, :N].set(
        support.astype(dtype))
    w1_p = stack_w(W1, f_in, hidden)
    w2_p = stack_w(W2, hidden, f_out)

    kernel = functools.partial(_gcn_fused_kernel, support_num=S, tm=tm, p=P)

    # --- VMEM budget from actual tile sizes (double-buffered I/O + scratch),
    #     with headroom, capped at 48 MiB for v7x's 64 MiB VMEM.
    isz = jnp.dtype(dtype).itemsize
    need = ((2 * x_p.size + 2 * S * tm * n_pad + 2 * w1_p.size + 2 * w2_p.size
             + 2 * tm * P) * isz
            + (n_pad * S * P + n_pad * P) * isz)
    vmem_limit = int(min(max(int(need * 1.5), 8 << 20), 48 << 20))

    out_p = pl.pallas_call(
        kernel,
        out_shape=jax.ShapeDtypeStruct((n_pad, P), dtype),
        grid_spec=pltpu.PrefetchScalarGridSpec(
            num_scalar_prefetch=0,
            grid=(2, r_tiles),                       # (phase, node-row tile)
            in_specs=[
                pl.BlockSpec((n_pad, P), lambda ph, r: (0, 0)),       # x (resident)
                pl.BlockSpec((S, tm, n_pad), lambda ph, r: (0, r, 0)),  # support rows
                pl.BlockSpec((P, S * P), lambda ph, r: (0, 0)),       # W1 stacked
                pl.BlockSpec((P, S * P), lambda ph, r: (0, 0)),       # W2 stacked
            ],
            out_specs=pl.BlockSpec((tm, P), lambda ph, r: (r, 0)),
            scratch_shapes=[
                pltpu.VMEM((n_pad, S * P), dtype),   # stacked pre-multiplication
                pltpu.VMEM((n_pad, P), dtype),       # full layer-1 output h
            ],
        ),
        compiler_params=pltpu.CompilerParams(
            # phase 1 needs ALL of phase 0's h -> both axes must stay sequential.
            dimension_semantics=("arbitrary", "arbitrary"),
            vmem_limit_bytes=vmem_limit,
        ),
    )(x_p, sup_p, w1_p, w2_p)

    return out_p[:N, :f_out]


def _ref_layer(x, sup, W, relu):
    o = sum(sup[i] @ (x @ W[i]) for i in range(sup.shape[0]))
    return jnp.maximum(o, 0.0) if relu else o


def _ref_forward(x, support, W1, W2):
    return _ref_layer(_ref_layer(x, support, W1, True), support, W2, False)


if __name__ == "__main__":
    input_dim, hidden_dim, output_dim, support_num = 8, 32, 10, 2
    fwd = jax.jit(gcn_forward)

    key = jax.random.PRNGKey(0)

    # Case 1: small, module-consistent shapes (single row tile).
    k_x, k_s, k_w1, k_w2 = jax.random.split(key, 4)
    N = 16
    x = jax.random.normal(k_x, (N, input_dim), dtype=jnp.float32)
    support = jax.random.normal(k_s, (support_num, N, N), dtype=jnp.float32)
    W1 = jax.random.normal(k_w1, (support_num, input_dim, hidden_dim),
                           dtype=jnp.float32)
    W2 = jax.random.normal(k_w2, (support_num, hidden_dim, output_dim),
                           dtype=jnp.float32)

    out = jax.block_until_ready(fwd(x, support, W1, W2))
    ref = _ref_forward(x, support, W1, W2)
    assert out.shape == (N, output_dim)
    assert jnp.allclose(out, ref, atol=1e-4, rtol=1e-4)

    # Case 2: larger node count to exercise the multi-row-tile grid path.
    k_x2, k_s2 = jax.random.split(jax.random.PRNGKey(1), 2)
    N2 = 300
    x2 = jax.random.normal(k_x2, (N2, input_dim), dtype=jnp.float32)
    support2 = jax.random.normal(k_s2, (support_num, N2, N2),
                                 dtype=jnp.float32) * 0.1
    out2 = jax.block_until_ready(fwd(x2, support2, W1, W2))
    ref2 = _ref_forward(x2, support2, W1, W2)
    assert out2.shape == (N2, output_dim)
    assert jnp.allclose(out2, ref2, atol=1e-3, rtol=1e-3)

    print("KERNEL_OK")
</pallas_src>

<mosaic_0001>
module attributes {stable_mosaic.version = 11 : i64} {
  func.func @_gcn_fused_kernel(%arg0: i32, %arg1: i32, %arg2: memref<16x128xf32, #tpu.memory_space<vmem>>, %arg3: memref<2x16x16xf32, #tpu.memory_space<vmem>>, %arg4: memref<128x256xf32, #tpu.memory_space<vmem>>, %arg5: memref<128x256xf32, #tpu.memory_space<vmem>>, %arg6: memref<16x128xf32, #tpu.memory_space<vmem>>, %arg7: memref<16x256xf32, #tpu.memory_space<vmem>>, %arg8: memref<16x128xf32, #tpu.memory_space<vmem>>) attributes {dimension_semantics = [#tpu.dimension_semantics<arbitrary>, #tpu.dimension_semantics<arbitrary>], iteration_bounds = array<i64: 2, 1>, scalar_prefetch = 0 : i64, scratch_operands = 2 : i64, tpu.core_type = #tpu.core_type<tc>, window_params = [{pipeline_mode = #tpu.pipeline_mode<synchronous>, transform_indices = @transform_0, window_bounds = array<i64: 16, 128>}, {transform_indices = @transform_1, window_bounds = array<i64: 2, 16, 16>}, {pipeline_mode = #tpu.pipeline_mode<synchronous>, transform_indices = @transform_2, window_bounds = array<i64: 128, 256>}, {pipeline_mode = #tpu.pipeline_mode<synchronous>, transform_indices = @transform_3, window_bounds = array<i64: 128, 256>}, {transform_indices = @transform_4, window_bounds = array<i64: 16, 128>}]} {
    %c0_i32 = arith.constant 0 : i32
    %0 = arith.cmpi eq, %arg0, %c0_i32 : i32
    %c0_i32_0 = arith.constant 0 : i32
    %1 = arith.cmpi eq, %arg1, %c0_i32_0 : i32
    %2 = arith.andi %0, %1 : i1
    %3 = arith.extui %2 : i1 to i32
    %c0_i32_1 = arith.constant 0 : i32
    %4 = arith.cmpi ne, %3, %c0_i32_1 : i32
    scf.if %4 {
      %c0_17 = arith.constant 0 : index
      %c0_18 = arith.constant 0 : index
      %27 = vector.load %arg2[%c0_17, %c0_18] : memref<16x128xf32, #tpu.memory_space<vmem>>, vector<16x128xf32>
      %c0_19 = arith.constant 0 : index
      %c0_20 = arith.constant 0 : index
      %28 = vector.load %arg4[%c0_19, %c0_20] : memref<128x256xf32, #tpu.memory_space<vmem>>, vector<128x256xf32>
      %cst_21 = arith.constant dense<0.000000e+00> : vector<16x256xf32>
      %29 = tpu.matmul %27, %28, %cst_21 {dimension_numbers = #tpu.dot_dimension_numbers<[1], [0], [0], [1], [0, 0, 1, 1], [], []>} : vector<16x128xf32>, vector<128x256xf32>, vector<16x256xf32> -> vector<16x256xf32>
      %c0_22 = arith.constant 0 : index
      %c0_23 = arith.constant 0 : index
      %30 = vector.load %arg7[%c0_22, %c0_23] : memref<16x256xf32, #tpu.memory_space<vmem>>, vector<16x256xf32>
      tpu.vector_store %arg7[%c0_22, %c0_23], %29 {strides = array<i32>} : memref<16x256xf32, #tpu.memory_space<vmem>>, vector<16x256xf32>,
    } else {
    }
    %c1_i32 = arith.constant 1 : i32
    %5 = arith.cmpi eq, %arg0, %c1_i32 : i32
    %c0_i32_2 = arith.constant 0 : i32
    %6 = arith.cmpi eq, %arg1, %c0_i32_2 : i32
    %7 = arith.andi %5, %6 : i1
    %8 = arith.extui %7 : i1 to i32
    %c0_i32_3 = arith.constant 0 : i32
    %9 = arith.cmpi ne, %8, %c0_i32_3 : i32
    scf.if %9 {
      %c0_17 = arith.constant 0 : index
      %c0_18 = arith.constant 0 : index
      %27 = vector.load %arg8[%c0_17, %c0_18] : memref<16x128xf32, #tpu.memory_space<vmem>>, vector<16x128xf32>
      %c0_19 = arith.constant 0 : index
      %c0_20 = arith.constant 0 : index
      %28 = vector.load %arg5[%c0_19, %c0_20] : memref<128x256xf32, #tpu.memory_space<vmem>>, vector<128x256xf32>
      %cst_21 = arith.constant dense<0.000000e+00> : vector<16x256xf32>
      %29 = tpu.matmul %27, %28, %cst_21 {dimension_numbers = #tpu.dot_dimension_numbers<[1], [0], [0], [1], [0, 0, 1, 1], [], []>} : vector<16x128xf32>, vector<128x256xf32>, vector<16x256xf32> -> vector<16x256xf32>
      %c0_22 = arith.constant 0 : index
      %c0_23 = arith.constant 0 : index
      %30 = vector.load %arg7[%c0_22, %c0_23] : memref<16x256xf32, #tpu.memory_space<vmem>>, vector<16x256xf32>
      tpu.vector_store %arg7[%c0_22, %c0_23], %29 {strides = array<i32>} : memref<16x256xf32, #tpu.memory_space<vmem>>, vector<16x256xf32>,
    } else {
    }
    %cst = arith.constant 0.000000e+00 : f32
    %10 = vector.broadcast %cst : f32 to vector<16x128xf32>
    %c0 = arith.constant 0 : index
    %c0_4 = arith.constant 0 : index
    %c0_5 = arith.constant 0 : index
    %11 = vector.load %arg3[%c0, %c0_4, %c0_5] : memref<2x16x16xf32, #tpu.memory_space<vmem>>, vector<1x16x16xf32>
    %12 = vector.shape_cast %11 : vector<1x16x16xf32> to vector<16x16xf32>
    %c0_6 = arith.constant 0 : index
    %c0_7 = arith.constant 0 : index
    %13 = vector.load %arg7[%c0_6, %c0_7] : memref<16x256xf32, #tpu.memory_space<vmem>>, vector<16x128xf32>
    %cst_8 = arith.constant dense<0.000000e+00> : vector<16x128xf32>
    %14 = tpu.matmul %12, %13, %cst_8 {dimension_numbers = #tpu.dot_dimension_numbers<[1], [0], [0], [1], [0, 0, 1, 1], [], []>} : vector<16x16xf32>, vector<16x128xf32>, vector<16x128xf32> -> vector<16x128xf32>
    %15 = arith.addf %10, %14 : vector<16x128xf32>
    %c1 = arith.constant 1 : index
    %c0_9 = arith.constant 0 : index
    %c0_10 = arith.constant 0 : index
    %16 = vector.load %arg3[%c1, %c0_9, %c0_10] : memref<2x16x16xf32, #tpu.memory_space<vmem>>, vector<1x16x16xf32>
    %17 = vector.shape_cast %16 : vector<1x16x16xf32> to vector<16x16xf32>
    %c0_11 = arith.constant 0 : index
    %c128 = arith.constant 128 : index
    %18 = vector.load %arg7[%c0_11, %c128] : memref<16x256xf32, #tpu.memory_space<vmem>>, vector<16x128xf32>
    %cst_12 = arith.constant dense<0.000000e+00> : vector<16x128xf32>
    %19 = tpu.matmul %17, %18, %cst_12 {dimension_numbers = #tpu.dot_dimension_numbers<[1], [0], [0], [1], [0, 0, 1, 1], [], []>} : vector<16x16xf32>, vector<16x128xf32>, vector<16x128xf32> -> vector<16x128xf32>
    %20 = arith.addf %15, %19 : vector<16x128xf32>
    %c0_i32_13 = arith.constant 0 : i32
    %21 = arith.cmpi eq, %arg0, %c0_i32_13 : i32
    %22 = arith.extui %21 : i1 to i32
    %c0_i32_14 = arith.constant 0 : i32
    %23 = arith.cmpi ne, %22, %c0_i32_14 : i32
    scf.if %23 {
      %cst_17 = arith.constant 0.000000e+00 : f32
      %27 = vector.broadcast %cst_17 : f32 to vector<16x128xf32>
      %28 = arith.maximumf %20, %27 : vector<16x128xf32>
      %c16_i32 = arith.constant 16 : i32
      %29 = arith.muli %arg1, %c16_i32 : i32
      %30 = tpu.assume_multiple %29, 16 : i32
      %31 = arith.index_cast %30 : i32 to index
      %c0_18 = arith.constant 0 : index
      %32 = vector.load %arg8[%31, %c0_18] : memref<16x128xf32, #tpu.memory_space<vmem>>, vector<16x128xf32>
      tpu.vector_store %arg8[%31, %c0_18], %28 {strides = array<i32>} : memref<16x128xf32, #tpu.memory_space<vmem>>, vector<16x128xf32>,
      %c0_19 = arith.constant 0 : index
      %c0_20 = arith.constant 0 : index
      %33 = vector.load %arg6[%c0_19, %c0_20] : memref<16x128xf32, #tpu.memory_space<vmem>>, vector<16x128xf32>
      tpu.vector_store %arg6[%c0_19, %c0_20], %28 {strides = array<i32>} : memref<16x128xf32, #tpu.memory_space<vmem>>, vector<16x128xf32>,
    } else {
    }
    %c1_i32_15 = arith.constant 1 : i32
    %24 = arith.cmpi eq, %arg0, %c1_i32_15 : i32
    %25 = arith.extui %24 : i1 to i32
    %c0_i32_16 = arith.constant 0 : i32
    %26 = arith.cmpi ne, %25, %c0_i32_16 : i32
    scf.if %26 {
      %c0_17 = arith.constant 0 : index
      %c0_18 = arith.constant 0 : index
      %27 = vector.load %arg6[%c0_17, %c0_18] : memref<16x128xf32, #tpu.memory_space<vmem>>, vector<16x128xf32>
      tpu.vector_store %arg6[%c0_17, %c0_18], %20 {strides = array<i32>} : memref<16x128xf32, #tpu.memory_space<vmem>>, vector<16x128xf32>,
    } else {
    }
    return
  }
  func.func @transform_0(%arg0: i32, %arg1: i32) -> (i32, i32) {
    %c0_i32 = arith.constant 0 : i32
    %c0_i32_0 = arith.constant 0 : i32
    %c0_i32_1 = arith.constant 0 : i32
    return %c0_i32, %c0_i32_0 : i32, i32
  }
  func.func @transform_1(%arg0: i32, %arg1: i32) -> (i32, i32, i32) {
    %c0_i32 = arith.constant 0 : i32
    %c0_i32_0 = arith.constant 0 : i32
    %c0_i32_1 = arith.constant 0 : i32
    return %c0_i32, %arg1, %c0_i32_0 : i32, i32, i32
  }
  func.func @transform_2(%arg0: i32, %arg1: i32) -> (i32, i32) {
    %c0_i32 = arith.constant 0 : i32
    %c0_i32_0 = arith.constant 0 : i32
    %c0_i32_1 = arith.constant 0 : i32
    return %c0_i32, %c0_i32_0 : i32, i32
  }
  func.func @transform_3(%arg0: i32, %arg1: i32) -> (i32, i32) {
    %c0_i32 = arith.constant 0 : i32
    %c0_i32_0 = arith.constant 0 : i32
    %c0_i32_1 = arith.constant 0 : i32
    return %c0_i32, %c0_i32_0 : i32, i32
  }
  func.func @transform_4(%arg0: i32, %arg1: i32) -> (i32, i32) {
    %c0_i32 = arith.constant 0 : i32
    %c0_i32_0 = arith.constant 0 : i32
    return %arg1, %c0_i32 : i32, i32
  }
}

</mosaic_0001>

<bundles_post_ra>
// kernel: gcn_forward.1
= control target key start
LH: loop header
LB: loop body
LE: loop exit
PB: predicated region body
PF: predicated region fallthrough
CT: control target
= control target key end

     0   :  { %9 = vsyncpa [#allocation5], 0  ;;  %s923_s15 = smov 0   ;;  %s925_s16 = smov 0   ;;  %s1184_s0 = inlined_call_operand.vmem [shape: f32[16,128], index: 0, kind: input, shape index: {}]   ;;  %s1185_s1 = inlined_call_operand.vmem [shape: f32[2,16,16], index: 1, kind: input, shape index: {}]   ;;  %s1186_s2 = inlined_call_operand.vmem [shape: f32[128,256], index: 2, kind: input, shape index: {}]   ;;  %s1187_s3 = inlined_call_operand.vmem [shape: f32[128,256], index: 3, kind: input, shape index: {}]   ;;  %s1188_s4 = inlined_call_operand.hbm [shape: f32[16,128], index: 4, kind: output, shape index: {}]  }
   0x1   :  { %s927_s17 = smov 0  }
   0x2 LB: > { %s700_s18 = sadd.s32 4294967295, %s891_s17   ;;  %s27_s19 = sadd.s32 1, %s887_s16  ;;  %s891_s17 = sphi %s927_s17, %s15_s17   ;;  %s887_s16 = sphi %s925_s16, %s1191_s16   ;;  %s883_s15 = sphi %s923_s15, %s1190_s15  }
   0x3   : > { %p29_p0 = scmp.ge.s32.totalorder %s27_s19, 2  ;;  %p703_p1 = scmp.ge.s32.totalorder %s891_s17, 1 }
   0x4   : > { %p176_p2 = scmp.lt.s32.totalorder %s891_s17, 3 }
   0x5   : > { %s1193_s19 = smov (%p29_p0, %s27_s19), 0 }
   0x6   : > { %p177_p3 = pnand %p703_p1, %p176_p2 }
   0x7   : > { %p204_p4 = scmp.eq.s32.totalorder (!%p177_p3), %s883_s15, 0 }
   0x8   : > { %180 = sbr.rel (%p177_p3) target bundleno = 709 (0x2c5), region = 36 }
   0xd   : > { %209 = sbr.rel (!%p204_p4) target bundleno = 243 (0xf3), region = 40  ;;  %v243_v0 = vld [vmem:[%s1186_s2 + $0xf8] sm:$0xff] (%p204_p4)  ;;  %v242_v1 = vld [vmem:[%s1186_s2 + $0xf0] sm:$0xff] (%p204_p4)  ;;  %v241_v2 = vld [vmem:[%s1186_s2 + $0xe8] sm:$0xff] (%p204_p4)  ;;  %v893_v34 = vmov (%p204_p4), 0.0  }
   0xe   : > { %244 = vmatprep.subr.mxu0 (%p204_p4), %v243_v0  ;;  %742 = vmatprep.subr.mxu1 (%p204_p4), %v243_v0  ;;  %v240_v3 = vld [vmem:[%s1186_s2 + $0xe0] sm:$0xff] (%p204_p4)  ;;  %v239_v4 = vld [vmem:[%s1186_s2 + $0xd8] sm:$0xff] (%p204_p4)  ;;  %v238_v5 = vld [vmem:[%s1186_s2 + $0xd0] sm:$0xff] (%p204_p4) }
   0xf   : > { %245 = vmatpush1.msra.mxu0 (%p204_p4), %v242_v1  ;;  %758 = vmatpush1.msra.mxu1 (%p204_p4), %v242_v1  ;;  %v237_v6 = vld [vmem:[%s1186_s2 + $0xc8] sm:$0xff] (%p204_p4)  ;;  %v236_v7 = vld [vmem:[%s1186_s2 + $0xc0] sm:$0xff] (%p204_p4)  ;;  %v235_v8 = vld [vmem:[%s1186_s2 + $0xb8] sm:$0xff] (%p204_p4) }
  0x10   : > { %246 = vmatprep.subr.mxu0 (%p204_p4), %v241_v2  ;;  %743 = vmatprep.subr.mxu1 (%p204_p4), %v241_v2  ;;  %v234_v9 = vld [vmem:[%s1186_s2 + $0xb0] sm:$0xff] (%p204_p4)  ;;  %v233_v10 = vld [vmem:[%s1186_s2 + $0xa8] sm:$0xff] (%p204_p4)  ;;  %v232_v11 = vld [vmem:[%s1186_s2 + $0xa0] sm:$0xff] (%p204_p4) }
  0x11   : > { %247 = vmatpush1.msra.mxu0 (%p204_p4), %v240_v3  ;;  %759 = vmatpush1.msra.mxu1 (%p204_p4), %v240_v3  ;;  %v231_v12 = vld [vmem:[%s1186_s2 + $0x98] sm:$0xff] (%p204_p4)  ;;  %v230_v13 = vld [vmem:[%s1186_s2 + $0x90] sm:$0xff] (%p204_p4)  ;;  %v229_v14 = vld [vmem:[%s1186_s2 + $0x88] sm:$0xff] (%p204_p4) }
  0x12   : > { %248 = vmatprep.subr.mxu0 %v239_v4  ;;  %744 = vmatprep.subr.mxu1 %v239_v4  ;;  %v228_v15 = vld [vmem:[%s1186_s2 + $0x80] sm:$0xff]  ;;  %v227_v16 = vld [vmem:[%s1186_s2 + $0x78] sm:$0xff]  ;;  %v226_v17 = vld [vmem:[%s1186_s2 + $0x70] sm:$0xff] }
  0x13   : > { %249 = vmatpush1.msra.mxu0 %v238_v5  ;;  %760 = vmatpush1.msra.mxu1 %v238_v5  ;;  %v225_v18 = vld [vmem:[%s1186_s2 + $0x68] sm:$0xff]  ;;  %v224_v19 = vld [vmem:[%s1186_s2 + $0x60] sm:$0xff]  ;;  %v223_v20 = vld [vmem:[%s1186_s2 + $0x58] sm:$0xff] }
  0x14   : > { %250 = vmatprep.subr.mxu0 %v237_v6  ;;  %745 = vmatprep.subr.mxu1 %v237_v6  ;;  %v222_v21 = vld [vmem:[%s1186_s2 + $0x50] sm:$0xff]  ;;  %v221_v22 = vld [vmem:[%s1186_s2 + $0x48] sm:$0xff]  ;;  %v220_v23 = vld [vmem:[%s1186_s2 + $0x40] sm:$0xff] }
  0x15   : > { %251 = vmatpush1.msra.mxu0 %v236_v7  ;;  %761 = vmatpush1.msra.mxu1 %v236_v7  ;;  %v219_v24 = vld [vmem:[%s1186_s2 + $0x38] sm:$0xff]  ;;  %v218_v25 = vld [vmem:[%s1186_s2 + $0x30] sm:$0xff]  ;;  %v217_v26 = vld [vmem:[%s1186_s2 + $0x28] sm:$0xff] }
  0x16   : > { %252 = vmatprep.subr.mxu0 %v235_v8  ;;  %746 = vmatprep.subr.mxu1 %v235_v8  ;;  %v216_v27 = vld [vmem:[%s1186_s2 + $0x20] sm:$0xff]  ;;  %v215_v28 = vld [vmem:[%s1186_s2 + $0x18] sm:$0xff]  ;;  %v214_v29 = vld [vmem:[%s1186_s2 + $0x10] sm:$0xff] }
  0x17   : > { %253 = vmatpush1.msra.mxu0 %v234_v9  ;;  %762 = vmatpush1.msra.mxu1 %v234_v9  ;;  %v213_v30 = vld [vmem:[%s1186_s2 + $0x8] sm:$0xff]  ;;  %v212_v31 = vld [vmem:[%s1186_s2] sm:$0xff] }
  0x18   : > { %254 = vmatprep.subr.mxu0 %v233_v10  ;;  %747 = vmatprep.subr.mxu1 %v233_v10  ;;  %v210_v32 = vld [vmem:[%s1184_s0] sm:$0xff]  ;;  %v211_v33 = vld [vmem:[%s1184_s0 + $0x8] sm:$0xff] }
  0x19   : > { %255 = vmatpush1.msra.mxu0 %v232_v11  ;;  %763 = vmatpush1.msra.mxu1 %v232_v11 }
  0x1a   : > { %256 = vmatprep.subr.mxu0 %v231_v12  ;;  %748 = vmatprep.subr.mxu1 %v231_v12 }
  0x1b   : > { %257 = vmatpush1.msra.mxu0 %v230_v13  ;;  %764 = vmatpush1.msra.mxu1 %v230_v13 }
  0x1c   : > { %258 = vmatprep.subr.mxu0 %v229_v14  ;;  %749 = vmatprep.subr.mxu1 %v229_v14 }
  0x1d   : > { %259 = vmatpush1.msra.mxu0 %v228_v15  ;;  %765 = vmatpush1.msra.mxu1 %v228_v15 }
  0x1e   : > { %260 = vmatprep.subr.mxu0 %v227_v16  ;;  %750 = vmatprep.subr.mxu1 %v227_v16 }
  0x1f   : > { %261 = vmatpush1.msra.mxu0 %v226_v17  ;;  %766 = vmatpush1.msra.mxu1 %v226_v17 }
  0x20   : > { %262 = vmatprep.subr.mxu0 %v225_v18  ;;  %751 = vmatprep.subr.mxu1 %v225_v18 }
  0x21   : > { %263 = vmatpush1.msra.mxu0 %v224_v19  ;;  %767 = vmatpush1.msra.mxu1 %v224_v19 }
  0x22   : > { %264 = vmatprep.subr.mxu0 %v223_v20  ;;  %752 = vmatprep.subr.mxu1 %v223_v20 }
  0x23   : > { %265 = vmatpush1.msra.mxu0 %v222_v21  ;;  %768 = vmatpush1.msra.mxu1 %v222_v21 }
  0x24   : > { %266 = vmatprep.subr.mxu0 %v221_v22  ;;  %753 = vmatprep.subr.mxu1 %v221_v22 }
  0x25   : > { %267 = vmatpush1.msra.mxu0 %v220_v23  ;;  %769 = vmatpush1.msra.mxu1 %v220_v23 }
  0x26   : > { %268 = vmatprep.subr.mxu0 %v219_v24  ;;  %754 = vmatprep.subr.mxu1 %v219_v24 }
  0x27   : > { %269 = vmatpush1.msra.mxu0 %v218_v25  ;;  %770 = vmatpush1.msra.mxu1 %v218_v25 }
  0x28   : > { %270 = vmatprep.subr.mxu0 %v217_v26  ;;  %755 = vmatprep.subr.mxu1 %v217_v26 }
  0x29   : > { %271 = vmatpush1.msra.mxu0 %v216_v27  ;;  %771 = vmatpush1.msra.mxu1 %v216_v27 }
  0x2a   : > { %272 = vmatprep.subr.mxu0 %v215_v28  ;;  %756 = vmatprep.subr.mxu1 %v215_v28 }
  0x2b   : > { %273 = vmatpush1.msra.mxu0 %v214_v29  ;;  %772 = vmatpush1.msra.mxu1 %v214_v29 }
  0x2c   : > { %274 = vmatprep.subr.mxu0 %v213_v30  ;;  %757 = vmatprep.subr.mxu1 %v213_v30 }
  0x2d   : > { %275 = vmatpush1.msra.mxu0 %v212_v31  ;;  %773 = vmatpush1.msra.mxu1 %v212_v31 }
  0x2e   : > { %308 = vmatprep.mubr.f32.mxu0 %v893_v34  ;;  %314 = vmatprep.mubr.f32.mxu1 %v893_v34 }
  0x2f   : > { %309 = vmatmul.mubr.f32.vlgmr.msra.gmra.mxu0 %v210_v32  ;;  %315 = vmatmul.mubr.f32.vlgmr.msra.gmra.mxu1 %v211_v33 }
  0xef   : > { %v310_v35 = vpop.f32.mrf.mxu0  ;;  %v316_v36 = vpop.f32.mrf.mxu1 }
  0xf0   : > { %321 = vst [vmem:[#allocation2 + $0x10] sm:$0xff] %v310_v35  ;;  %323 = vst [vmem:[#allocation2 + $0x18] sm:$0xff] %v316_v36 }
  0xf1   : > { %v312_v37 = vpop.f32.mrf.mxu0  ;;  %v318_v38 = vpop.f32.mrf.mxu1 }
  0xf2   : > { %322 = vst [vmem:[#allocation2] sm:$0xff] %v312_v37  ;;  %324 = vst [vmem:[#allocation2 + $0x8] sm:$0xff] %v318_v38 }
  0xf3 PF: > { %p325_p5 = scmp.eq.s32.totalorder %s883_s15, 1 }
  0xf4   : > { %v363_v39 = vld [vmem:[%s1187_s3 + $0xf8] sm:$0xff] (%p325_p5)  ;;  %v362_v40 = vld [vmem:[%s1187_s3 + $0xf0] sm:$0xff] (%p325_p5)  ;;  %v361_v41 = vld [vmem:[%s1187_s3 + $0xe8] sm:$0xff] (%p325_p5)  ;;  %v894_v9 = vmov (%p325_p5), 0.0  }
  0xf5   : > { %329 = sbr.rel (!%p325_p5) target bundleno = 474 (0x1da), region = 44  ;;  %364 = vmatprep.subr.mxu0 (%p325_p5), %v363_v39  ;;  %774 = vmatprep.subr.mxu1 (%p325_p5), %v363_v39  ;;  %v360_v42 = vld [vmem:[%s1187_s3 + $0xe0] sm:$0xff] (%p325_p5)  ;;  %v359_v43 = vld [vmem:[%s1187_s3 + $0xd8] sm:$0xff] (%p325_p5)  ;;  %v358_v44 = vld [vmem:[%s1187_s3 + $0xd0] sm:$0xff] (%p325_p5) }
  0xf6   : > { %365 = vmatpush1.msra.mxu0 (%p325_p5), %v362_v40  ;;  %790 = vmatpush1.msra.mxu1 (%p325_p5), %v362_v40  ;;  %v357_v45 = vld [vmem:[%s1187_s3 + $0xc8] sm:$0xff] (%p325_p5)  ;;  %v356_v46 = vld [vmem:[%s1187_s3 + $0xc0] sm:$0xff] (%p325_p5)  ;;  %v355_v47 = vld [vmem:[%s1187_s3 + $0xb8] sm:$0xff] (%p325_p5) }
  0xf7   : > { %366 = vmatprep.subr.mxu0 (%p325_p5), %v361_v41  ;;  %775 = vmatprep.subr.mxu1 (%p325_p5), %v361_v41  ;;  %v354_v48 = vld [vmem:[%s1187_s3 + $0xb0] sm:$0xff] (%p325_p5)  ;;  %v353_v49 = vld [vmem:[%s1187_s3 + $0xa8] sm:$0xff] (%p325_p5)  ;;  %v352_v50 = vld [vmem:[%s1187_s3 + $0xa0] sm:$0xff] (%p325_p5) }
  0xf8   : > { %367 = vmatpush1.msra.mxu0 (%p325_p5), %v360_v42  ;;  %791 = vmatpush1.msra.mxu1 (%p325_p5), %v360_v42  ;;  %v351_v51 = vld [vmem:[%s1187_s3 + $0x98] sm:$0xff] (%p325_p5)  ;;  %v350_v52 = vld [vmem:[%s1187_s3 + $0x90] sm:$0xff] (%p325_p5)  ;;  %v349_v53 = vld [vmem:[%s1187_s3 + $0x88] sm:$0xff] (%p325_p5) }
  0xf9   : > { %368 = vmatprep.subr.mxu0 (%p325_p5), %v359_v43  ;;  %776 = vmatprep.subr.mxu1 (%p325_p5), %v359_v43  ;;  %v348_v54 = vld [vmem:[%s1187_s3 + $0x80] sm:$0xff] (%p325_p5)  ;;  %v347_v55 = vld [vmem:[%s1187_s3 + $0x78] sm:$0xff] (%p325_p5)  ;;  %v346_v56 = vld [vmem:[%s1187_s3 + $0x70] sm:$0xff] (%p325_p5) }
  0xfa   : > { %369 = vmatpush1.msra.mxu0 %v358_v44  ;;  %792 = vmatpush1.msra.mxu1 %v358_v44  ;;  %v345_v57 = vld [vmem:[%s1187_s3 + $0x68] sm:$0xff]  ;;  %v344_v58 = vld [vmem:[%s1187_s3 + $0x60] sm:$0xff]  ;;  %v343_v59 = vld [vmem:[%s1187_s3 + $0x58] sm:$0xff] }
  0xfb   : > { %370 = vmatprep.subr.mxu0 %v357_v45  ;;  %777 = vmatprep.subr.mxu1 %v357_v45  ;;  %v342_v60 = vld [vmem:[%s1187_s3 + $0x50] sm:$0xff]  ;;  %v341_v61 = vld [vmem:[%s1187_s3 + $0x48] sm:$0xff]  ;;  %v340_v62 = vld [vmem:[%s1187_s3 + $0x40] sm:$0xff] }
  0xfc   : > { %371 = vmatpush1.msra.mxu0 %v356_v46  ;;  %793 = vmatpush1.msra.mxu1 %v356_v46  ;;  %v339_v63 = vld [vmem:[%s1187_s3 + $0x38] sm:$0xff]  ;;  %v338_v0 = vld [vmem:[%s1187_s3 + $0x30] sm:$0xff]  ;;  %v337_v1 = vld [vmem:[%s1187_s3 + $0x28] sm:$0xff] }
  0xfd   : > { %372 = vmatprep.subr.mxu0 %v355_v47  ;;  %778 = vmatprep.subr.mxu1 %v355_v47  ;;  %v336_v2 = vld [vmem:[%s1187_s3 + $0x20] sm:$0xff]  ;;  %v335_v3 = vld [vmem:[%s1187_s3 + $0x18] sm:$0xff]  ;;  %v334_v4 = vld [vmem:[%s1187_s3 + $0x10] sm:$0xff] }
  0xfe   : > { %373 = vmatpush1.msra.mxu0 %v354_v48  ;;  %794 = vmatpush1.msra.mxu1 %v354_v48  ;;  %v333_v5 = vld [vmem:[%s1187_s3 + $0x8] sm:$0xff]  ;;  %v332_v6 = vld [vmem:[%s1187_s3] sm:$0xff] }
  0xff   : > { %374 = vmatprep.subr.mxu0 %v353_v49  ;;  %779 = vmatprep.subr.mxu1 %v353_v49  ;;  %v330_v7 = vld [vmem:[#allocation3] sm:$0xff]  ;;  %v331_v8 = vld [vmem:[#allocation3 + $0x8] sm:$0xff] }
 0x100   : > { %375 = vmatpush1.msra.mxu0 %v352_v50  ;;  %795 = vmatpush1.msra.mxu1 %v352_v50 }
 0x101   : > { %376 = vmatprep.subr.mxu0 %v351_v51  ;;  %780 = vmatprep.subr.mxu1 %v351_v51 }
 0x102   : > { %377 = vmatpush1.msra.mxu0 %v350_v52  ;;  %796 = vmatpush1.msra.mxu1 %v350_v52 }
 0x103   : > { %378 = vmatprep.subr.mxu0 %v349_v53  ;;  %781 = vmatprep.subr.mxu1 %v349_v53 }
 0x104   : > { %379 = vmatpush1.msra.mxu0 %v348_v54  ;;  %797 = vmatpush1.msra.mxu1 %v348_v54 }
 0x105   : > { %380 = vmatprep.subr.mxu0 %v347_v55  ;;  %782 = vmatprep.subr.mxu1 %v347_v55 }
 0x106   : > { %381 = vmatpush1.msra.mxu0 %v346_v56  ;;  %798 = vmatpush1.msra.mxu1 %v346_v56 }
 0x107   : > { %382 = vmatprep.subr.mxu0 %v345_v57  ;;  %783 = vmatprep.subr.mxu1 %v345_v57 }
 0x108   : > { %383 = vmatpush1.msra.mxu0 %v344_v58  ;;  %799 = vmatpush1.msra.mxu1 %v344_v58 }
 0x109   : > { %384 = vmatprep.subr.mxu0 %v343_v59  ;;  %784 = vmatprep.subr.mxu1 %v343_v59 }
 0x10a   : > { %385 = vmatpush1.msra.mxu0 %v342_v60  ;;  %800 = vmatpush1.msra.mxu1 %v342_v60 }
 0x10b   : > { %386 = vmatprep.subr.mxu0 %v341_v61  ;;  %785 = vmatprep.subr.mxu1 %v341_v61 }
 0x10c   : > { %387 = vmatpush1.msra.mxu0 %v340_v62  ;;  %801 = vmatpush1.msra.mxu1 %v340_v62 }
 0x10d   : > { %388 = vmatprep.subr.mxu0 %v339_v63  ;;  %786 = vmatprep.subr.mxu1 %v339_v63 }
 0x10e   : > { %389 = vmatpush1.msra.mxu0 %v338_v0  ;;  %802 = vmatpush1.msra.mxu1 %v338_v0 }
 0x10f   : > { %390 = vmatprep.subr.mxu0 %v337_v1  ;;  %787 = vmatprep.subr.mxu1 %v337_v1 }
 0x110   : > { %391 = vmatpush1.msra.mxu0 %v336_v2  ;;  %803 = vmatpush1.msra.mxu1 %v336_v2 }
 0x111   : > { %392 = vmatprep.subr.mxu0 %v335_v3  ;;  %788 = vmatprep.subr.mxu1 %v335_v3 }
 0x112   : > { %393 = vmatpush1.msra.mxu0 %v334_v4  ;;  %804 = vmatpush1.msra.mxu1 %v334_v4 }
 0x113   : > { %394 = vmatprep.subr.mxu0 %v333_v5  ;;  %789 = vmatprep.subr.mxu1 %v333_v5 }
 0x114   : > { %395 = vmatpush1.msra.mxu0 %v332_v6  ;;  %805 = vmatpush1.msra.mxu1 %v332_v6 }
 0x115   : > { %428 = vmatprep.mubr.f32.mxu0 %v894_v9  ;;  %434 = vmatprep.mubr.f32.mxu1 %v894_v9 }
 0x116   : > { %429 = vmatmul.mubr.f32.vlgmr.msra.gmra.mxu0 %v330_v7  ;;  %435 = vmatmul.mubr.f32.vlgmr.msra.gmra.mxu1 %v331_v8 }
 0x1d6   : > { %v430_v10 = vpop.f32.mrf.mxu0  ;;  %v436_v11 = vpop.f32.mrf.mxu1 }
 0x1d7   : > { %441 = vst [vmem:[#allocation2 + $0x10] sm:$0xff] %v430_v10  ;;  %443 = vst [vmem:[#allocation2 + $0x18] sm:$0xff] %v436_v11 }
 0x1d8   : > { %v432_v12 = vpop.f32.mrf.mxu0  ;;  %v438_v13 = vpop.f32.mrf.mxu1 }
 0x1d9   : > { %442 = vst [vmem:[#allocation2] sm:$0xff] %v432_v12  ;;  %444 = vst [vmem:[#allocation2 + $0x8] sm:$0xff] %v438_v13 }
 0x1da PF: > { %v706_v18 = vld [vmem:[%s1185_s1 + $0x10] sm:$0xff]  ;;  %vm454_vm0 = vcmask 130048   ;;  %v445_v19 = vld [vmem:[%s1185_s1] sm:$0xff]  ;;  %v707_v20 = vld [vmem:[%s1185_s1 + $0x18] sm:$0xff]  ;;  %p712_p6 = scmp.ne.s32.totalorder %s883_s15, 0 }
 0x1db   : > { %v446_v21 = vld [vmem:[%s1185_s1 + $0x8] sm:$0xff]  ;;  %732 = vmatprep.mubr.msk.f32.mxu0 %vm454_vm0, %v706_v18  ;;  %739 = vmatprep.mubr.msk.f32.mxu1 %vm454_vm0, %v445_v19 }
 0x1de   : > { %v448_v15 = vld [vmem:[#allocation2 + $0x18] sm:$0xff]  ;;  %v447_v17 = vld [vmem:[#allocation2 + $0x10] sm:$0xff] }
 0x1df   : > { %735 = vmatprep.subr.mxu1 %v448_v15 }
 0x1e0   : > { %v453_v14 = vld [vmem:[#allocation2 + $0x8] sm:$0xff]  ;;  %v452_v16 = vld [vmem:[#allocation2] sm:$0xff]  ;;  %736 = vmatpush3.msra.mxu1 %v448_v15 }
 0x1e1   : > { %728 = vmatprep.subr.mxu0 %v453_v14  ;;  %737 = vmatprep.subr.mxu1 %v447_v17 }
 0x1e2   : > { %729 = vmatpush3.msra.mxu0 %v453_v14  ;;  %738 = vmatpush3.msra.mxu1 %v447_v17 }
 0x1e3   : > { %730 = vmatprep.subr.mxu0 %v452_v16  ;;  %740 = vmatmul.mubr.msk.f32.vlgmr.msra.gmra.mxu1 %vm454_vm0, %v446_v21 }
 0x1e4   : > { %731 = vmatpush3.msra.mxu0 %v452_v16 }
 0x1e5   : > { %733 = vmatmul.mubr.msk.f32.vlgmr.msra.gmra.mxu0 %vm454_vm0, %v707_v20 }
 0x2a3   : > { %v741_v23 = vpop.f32.mrf.mxu1 }
 0x2a4   : > { %619 = sbr.rel (%p712_p6) target bundleno = 685 (0x2ad), region = 48 }
 0x2a5   : > { %v734_v22 = vpop.f32.mrf.mxu0  ;;  %v608_v26 = vpop.f32.mrf.mxu1 }
 0x2a6   : > { %v614_v24 = vadd.f32 %v741_v23, %v734_v22 }
 0x2a7   : > { %v527_v25 = vpop.f32.mrf.mxu0 }
 0x2a8   : > { %v609_v27 = vadd.f32 %v608_v26, %v527_v25 }
 0x2a9   : > { %v621_v29 = vmax.f32 %v614_v24, 0.0 }
 0x2aa   : > { %v620_v28 = vmax.f32 %v609_v27, 0.0 }
 0x2ab   : > { %625 = vst [vmem:[#allocation3 + $0x8] sm:$0xff] %v621_v29  ;;  %627 = vst [vmem:[#allocation4 + $0x8] sm:$0xff] %v621_v29 }
 0x2ac   : > { %624 = vst [vmem:[#allocation3] sm:$0xff] %v620_v28  ;;  %626 = vst [vmem:[#allocation4] sm:$0xff] %v620_v28 }
 0x2ad PF: > { %p713_p7 = scmp.ne.s32.totalorder %s883_s15, 1 }
 0x2af   : > { %630 = sbr.rel (%p713_p7) target bundleno = 693 (0x2b5), region = 52 }
 0x2b4   : > { %631 = vst [vmem:[#allocation4] sm:$0xff] %v609_v27  ;;  %632 = vst [vmem:[#allocation4 + $0x8] sm:$0xff] %v614_v24 }
 0x2b5 PF: > { %p1160_p8 = scmp.eq.s32.totalorder %s700_s18, 1  ;;  %s895_s9 = smov [#allocation4]  }
 0x2b6   : > { %s642_s10 = sshll.u32 %s895_s9, 4  ;;  %s643_s10 = int_to_ptr.vmem [resolvable:$true] %s642_s10 }
 0x2b7   : > { %s841_s11 = scalar_lea.vmem %s643_s10, 256  ;;  %p848_p12 = scmp.lt.s32.totalorder %s643_s10, %s643_s10 }
 0x2b8   : > { %p842_p9 = scmp.ne.s32.totalorder %s643_s10, %s841_s11  ;;  %p849_p13 = scmp.lt.s32.totalorder %s841_s11, %s841_s11 }
 0x2ba   : > { %p843_p10 = pnand %p842_p9, %p1160_p8  ;;  %p850_p0 = por %p849_p13, %p848_p12 }
 0x2bc   : > { %p844_p11 = pneg %p843_p10 }
 0x2be   : > { %p851_p1 = pnand %p850_p0, %p844_p11 }
 0x2c0   : > { %854 = shalt.err (!%p851_p1)
}
 0x2c1   : > { %s896_s15 = smov 128   ;;  %s897_s18 = smov 8  }
 0x2c2   : > { %807 = dma.vmem_to_hbm [thread:$0]  (%p1160_p8), %s643_s10, 256, %s1188_s4, [#allocation5], %s896_s15, %s896_s15, %s897_s18  }
 0x2c3   : > { %878 = dma.done.wait (%p1160_p8), [#allocation5], 256  }
 0x2c4   : > { %880 = vsyncadd (%p1160_p8), [#allocation5], 4294967040 }
 0x2c5 PF: > { %s15_s17 = sadd.s32 1, %s891_s17   ;;  %s1190_s15 = smov %s887_s16 }
 0x2c6   : > { %p12_p2 = scmp.ge.s32.totalorder %s15_s17, 4   ;;  %s1191_s16 = smov %s1193_s19 }
 0x2c8   :  { %14 = sbr.rel (!%p12_p2) target bundleno = 2 (0x2), region = 82 }
 0x2cd   :  { %658 = vsyncpa [#allocation5], 1 }
 0x2ce   :  { %660 = vsyncpa [#allocation5 + $0x1], 1 }

</bundles_post_ra>
